<compile_context>
chip_gen: v7x
topology: tpu7x:2x2x1
jax: 0.10.0
libtpu: 0.0.40
codegen_flags: <defaults>
</compile_context>

<pallas_src>
import functools
import math

import jax
import jax.numpy as jnp
from jax import lax
from jax.experimental import pallas as pl
from jax.experimental.pallas import tpu as pltpu


_LANE = 128
_MIN_TILE = 16384          # below this the per-step fixed overhead is no longer negligible
_MAX_TILE = 131072         # keeps double-buffered blocks well inside every generation's VMEM


# ---------------------------------------------------------------------------
# static-exponent helpers (exponents are Python floats -> specialized at trace)
# ---------------------------------------------------------------------------
def _pow_static(x, e):
    """x ** e for x >= 0 with a static exponent, avoiding exp/log when possible."""
    e = float(e)
    if e == 0.0:
        return jnp.ones_like(x)
    if e == 1.0:
        return x
    if e == 2.0:
        return x * x
    if e == 0.5:
        return jnp.sqrt(x)
    if e == 1.5:
        return x * jnp.sqrt(x)
    if e == -1.0:
        return 1.0 / x
    if e > 0 and e == int(e) and int(e) <= 8:
        r = x
        for _ in range(int(e) - 1):
            r = r * x
        return r
    # generic fallback (x >= 0): matches torch pow for x > 0, gives 0 at x == 0
    return jnp.where(x > 0, jnp.exp(e * jnp.log(jnp.maximum(x, 1e-38))), 0.0)


def _log_t(u, t):
    t = float(t)
    if t == 1.0:
        return jnp.log(u)
    return (_pow_static(u, 1.0 - t) - 1.0) / (1.0 - t)


def _exp_t(u, t):
    t = float(t)
    if t == 1.0:
        return jnp.exp(u)
    return _pow_static(jnp.maximum(1.0 + (1.0 - t) * u, 0.0), 1.0 / (1.0 - t))


def _tempered_softmax(x, t, axis, num_iters):
    """Tempered softmax along `axis` (static t, unrolled iterations)."""
    t = float(t)
    if t == 1.0:
        m = jnp.max(x, axis=axis, keepdims=True)
        e = jnp.exp(x - m)
        return e * (1.0 / jnp.sum(e, axis=axis, keepdims=True))
    mu = jnp.max(x, axis=axis, keepdims=True)
    na0 = x - mu
    if t > 1.0:  # fixed-point normalization
        na = na0
        for _ in range(num_iters):
            lp = jnp.sum(_exp_t(na, t), axis=axis, keepdims=True)
            na = na0 * _pow_static(lp, 1.0 - t)
        lp = jnp.sum(_exp_t(na, t), axis=axis, keepdims=True)
        norm_c = -_log_t(1.0 / lp, t) + mu
        return _exp_t(x - norm_c, t)
    # t < 1.0: binary-search normalization
    eff_dim = jnp.sum((na0 > -1.0 / (1.0 - t)).astype(x.dtype),
                      axis=axis, keepdims=True)
    lower = jnp.zeros_like(mu)
    upper = -_log_t(1.0 / eff_dim, t) * jnp.ones_like(lower)
    for _ in range(num_iters):
        lp = (upper + lower) * 0.5
        sp = jnp.sum(_exp_t(na0 - lp, t), axis=axis, keepdims=True)
        upd = (sp < 1.0).astype(x.dtype)
        lower = lower * upd + (1.0 - upd) * lp
        upper = upper * (1.0 - upd) + upd * lp
    norm_c = (upper + lower) * 0.5 + mu
    return _exp_t(x - norm_c, t)


# ---------------------------------------------------------------------------
# kernel: transposed layout (C on sublanes, batch on lanes), one tile per step
# ---------------------------------------------------------------------------
def _focal_cosine_bitemper_kernel(x_ref, lbl_ref, o_ref, *,
                                  alpha, gamma, xent, t1, t2, num_iters,
                                  n_valid):
    x_raw = x_ref[...].astype(jnp.float32)        # (C, TN), upcast in-register
    lbl_raw = lbl_ref[...]                        # (1, TN) int32
    c, tn = x_raw.shape
    inv_n = 1.0 / float(n_valid)

    # Mask for lanes past the real batch (ragged last block / <=127-lane pad).
    # Must be applied BEFORE any exp/rsqrt: the ragged tail of the last block
    # is unspecified (possibly stale VMEM), so Inf/NaN must never be produced.
    sample_ids = pl.program_id(0) * tn + lax.broadcasted_iota(jnp.int32, (1, tn), 1)
    valid_b = sample_ids < n_valid                # (1, TN) bool
    valid = valid_b.astype(jnp.float32)
    x = jnp.where(valid_b, x_raw, 0.0)            # (C, TN)
    lbl = jnp.where(valid_b, lbl_raw, 0)          # (1, TN) safe class index

    class_ids = lax.broadcasted_iota(jnp.int32, (c, tn), 0)
    onehot = (class_ids == lbl).astype(jnp.float32)           # (C, TN)

    # ---- shared per-row intermediates (each reduction is over the C sublanes)
    sumsq = jnp.sum(x * x, axis=0, keepdims=True)             # (1, TN)
    inv_norm = lax.rsqrt(jnp.maximum(sumsq, 1e-24))
    x_lbl = jnp.sum(onehot * x, axis=0, keepdims=True)        # logit at label

    m = jnp.max(x, axis=0, keepdims=True)
    ez = jnp.exp(x - m)                                       # (C, TN)
    sum_ez = jnp.sum(ez, axis=0, keepdims=True)
    inv_sum = pl.reciprocal(sum_ez)               # exact: meets 1e-5 tolerance
    e_lbl = jnp.sum(onehot * ez, axis=0, keepdims=True)
    pt = e_lbl * inv_sum                          # softmax at label, no extra exp

    # ---------------- FocalCosineLoss ----------------
    # cosine_embedding_loss(F.normalize(x), onehot, y=+1) per row == 1 - x[label]/||x||
    row_cos = 1.0 - x_lbl * inv_norm
    cent = jnp.log(sum_ez) - (x_lbl - m)                       # per-sample CE
    focal = alpha * _pow_static(1.0 - pt, gamma) * cent

    # ---------------- BiTemperedLoss ----------------
    # TODO(synk): label_smoothing>0 path uses python random.random() branching
    #             (non-deterministic); only the smoothing=0 path is implemented.
    inv_2mt1 = 1.0 / (2.0 - t1)
    if float(t1) == 1.0:
        logt_one = math.log(1.0 + 1e-10)
    else:
        logt_one = ((1.0 + 1e-10) ** (1.0 - t1) - 1.0) / (1.0 - t1)

    if float(t2) == 1.0:
        probs = ez * inv_sum                                   # reuse softmax
        p_lbl = pt
    else:
        probs = _tempered_softmax(x, t2, axis=0, num_iters=num_iters)
        p_lbl = jnp.sum(onehot * probs, axis=0, keepdims=True)

    # onehot*log_t(onehot+1e-10) sums to logt_one per row;
    # onehot^(2-t1)/(2-t1) sums to inv_2mt1 per row.
    row_b = (logt_one - _log_t(p_lbl, t1) - inv_2mt1
             + jnp.sum(_pow_static(probs, 2.0 - t1), axis=0, keepdims=True) * inv_2mt1)

    # ---------------- fused reduction -> one scalar partial per grid step ----
    total_row = (0.7 * (row_cos + xent * focal) + 0.3 * row_b) * valid
    o_ref[0, 0] = jnp.sum(total_row) * inv_n


# ---------------------------------------------------------------------------
# wrapper
# ---------------------------------------------------------------------------
def make_focal_cosine_bitemper_loss(alpha=1.0, gamma=2.0, xent=0.1,
                                    classes=5, t1=0.5, t2=1.0, num_iters=5,
                                    tile_n=65536, pred_layout="nc"):
    """pred_layout='nc' expects (N, C) logits (PyTorch layout, wrapper transposes);
    pred_layout='cn' expects producer-provided (C, N) logits (no extra HBM pass)."""
    alpha, gamma, xent, t1, t2 = (float(alpha), float(gamma), float(xent),
                                  float(t1), float(t2))
    num_iters = int(num_iters)
    classes = int(classes)
    assert pred_layout in ("nc", "cn")
    # lane-aligned tile, capped so double-buffered blocks stay modest everywhere
    tn_cfg = max(_LANE, (min(int(tile_n), _MAX_TILE) // _LANE) * _LANE)

    @jax.jit
    def loss_fn(pred, label):
        if pred_layout == "cn":
            c, n = pred.shape
        else:
            n, c = pred.shape
        assert c == classes

        n_pad = ((n + _LANE - 1) // _LANE) * _LANE     # <=127 extra lanes, fuses w/ transpose
        tn = min(tn_cfg, n_pad)
        if n_pad >= 2 * _MIN_TILE:
            # Keep grid >= 2 so both v7x TensorCores get work, without shrinking
            # tiles below the overhead-amortizing minimum.
            half = (((n_pad + 1) // 2 + _LANE - 1) // _LANE) * _LANE
            tn = min(tn, max(_MIN_TILE, half))
        grid = (n_pad + tn - 1) // tn

        # Lane-dense layout: classes -> sublanes, batch -> lanes.  No dtype cast
        # here (bf16 logits stream at half the HBM bytes; kernel upcasts).
        pred_cn = pred if pred_layout == "cn" else pred.T
        lbl = label.astype(jnp.int32).reshape(1, n)
        if n_pad != n:
            pred_cn = jnp.pad(pred_cn, ((0, 0), (0, n_pad - n)))
            lbl = jnp.pad(lbl, ((0, 0), (0, n_pad - n)))

        kernel = functools.partial(
            _focal_cosine_bitemper_kernel,
            alpha=alpha, gamma=gamma, xent=xent, t1=t1, t2=t2,
            num_iters=num_iters, n_valid=n)

        # x + label blocks, double-buffered, sublane-padded to 8 rows in VMEM
        vmem_need = 2 * (8 * tn * 4) + 2 * (8 * tn * 4)
        vmem_limit = int(min(48 << 20, max(32 << 20, vmem_need + (8 << 20))))

        partials = pl.pallas_call(
            kernel,
            out_shape=jax.ShapeDtypeStruct((grid, 1), jnp.float32),
            grid=(grid,),
            in_specs=[
                pl.BlockSpec((classes, tn), lambda i: (0, i)),
                pl.BlockSpec((1, tn), lambda i: (0, i)),
            ],
            out_specs=pl.BlockSpec((1, 1), lambda i: (i, 0),
                                   memory_space=pltpu.MemorySpace.SMEM),
            compiler_params=pltpu.CompilerParams(
                dimension_semantics=("parallel",),
                vmem_limit_bytes=vmem_limit),
        )(pred_cn, lbl)
        return jnp.sum(partials)

    return loss_fn


# ---------------------------------------------------------------------------
# independent pure-JAX reference (mirrors the PyTorch module; self-check only)
# ---------------------------------------------------------------------------
def _ref_log_t(u, t):
    if t == 1.0:
        return jnp.log(u)
    return (jnp.power(u, 1.0 - t) - 1.0) / (1.0 - t)


def _ref_exp_t(u, t):
    if t == 1.0:
        return jnp.exp(u)
    return jnp.power(jnp.maximum(1.0 + (1.0 - t) * u, 0.0), 1.0 / (1.0 - t))


def _ref_tempered_softmax(x, t, num_iters=5):
    if t == 1.0:
        return jax.nn.softmax(x, axis=-1)
    mu = jnp.max(x, axis=-1, keepdims=True)
    na0 = x - mu
    if t > 1.0:
        na = na0
        for _ in range(num_iters):
            lp = jnp.sum(_ref_exp_t(na, t), axis=-1, keepdims=True)
            na = na0 * jnp.power(lp, 1.0 - t)
        lp = jnp.sum(_ref_exp_t(na, t), axis=-1, keepdims=True)
        norm_c = -_ref_log_t(1.0 / lp, t) + mu
        return _ref_exp_t(x - norm_c, t)
    eff_dim = jnp.sum((na0 > -1.0 / (1.0 - t)).astype(x.dtype), axis=-1, keepdims=True)
    lower = jnp.zeros_like(mu)
    upper = -_ref_log_t(1.0 / eff_dim, t) * jnp.ones_like(lower)
    for _ in range(num_iters):
        lp = (upper + lower) / 2.0
        sp = jnp.sum(_ref_exp_t(na0 - lp, t), axis=-1, keepdims=True)
        upd = (sp < 1.0).astype(x.dtype)
        lower = lower * upd + (1.0 - upd) * lp
        upper = upper * (1.0 - upd) + upd * lp
    norm_c = (upper + lower) / 2.0 + mu
    return _ref_exp_t(x - norm_c, t)


def _reference(pred, label, alpha=1.0, gamma=2.0, xent=0.1,
               classes=5, t1=0.5, t2=1.0, num_iters=5):
    x = pred.astype(jnp.float32)
    onehot = jax.nn.one_hot(label, classes, dtype=jnp.float32)
    xn = x / jnp.maximum(jnp.linalg.norm(x, axis=-1, keepdims=True), 1e-12)
    cos = jnp.sum(xn * onehot, -1) / jnp.maximum(
        jnp.linalg.norm(xn, axis=-1) * jnp.linalg.norm(onehot, axis=-1), 1e-8)
    cosine_loss = jnp.mean(1.0 - cos)
    logp = jax.nn.log_softmax(x, axis=-1)
    cent = -jnp.sum(onehot * logp, -1)
    focal = jnp.mean(alpha * (1.0 - jnp.exp(-cent)) ** gamma * cent)
    f = cosine_loss + xent * focal
    probs = _ref_tempered_softmax(x, t2, num_iters)
    lv = (onehot * _ref_log_t(onehot + 1e-10, t1)
          - onehot * _ref_log_t(probs, t1)
          - jnp.power(onehot, 2.0 - t1) / (2.0 - t1)
          + jnp.power(probs, 2.0 - t1) / (2.0 - t1))
    b = jnp.mean(jnp.sum(lv, -1))
    return 0.7 * f + 0.3 * b


if __name__ == "__main__":
    C = 5
    N = 300   # non-multiple of 128 -> exercises the tail handling
    key = jax.random.PRNGKey(0)
    kx, kl = jax.random.split(key)
    pred = jax.random.normal(kx, (N, C), dtype=jnp.float32)
    label = jax.random.randint(kl, (N,), 0, C, dtype=jnp.int32)

    ref = _reference(pred, label, classes=C, t1=0.5, t2=1.0)

    # 1) default config: one big lane-dense tile (grid == 1)
    loss_fn = make_focal_cosine_bitemper_loss(classes=C, t1=0.5, t2=1.0)
    out = loss_fn(pred, label)
    jax.block_until_ready(out)
    assert jnp.allclose(out, ref, rtol=1e-5, atol=1e-5), (out, ref)

    # 2) small tile -> grid = 2 with a ragged last block: exercises the
    #    in-kernel masking that replaced the old pad-to-tile wrapper pass
    loss_fn_small = make_focal_cosine_bitemper_loss(classes=C, t1=0.5, t2=1.0,
                                                    tile_n=256)
    out_small = loss_fn_small(pred, label)
    jax.block_until_ready(out_small)
    assert jnp.allclose(out_small, ref, rtol=1e-5, atol=1e-5), (out_small, ref)

    # 3) bf16 logits stream straight into the kernel (half the HBM bytes);
    #    compare against the reference evaluated on the same rounded inputs
    pred_bf16 = pred.astype(jnp.bfloat16)
    ref_bf16 = _reference(pred_bf16.astype(jnp.float32), label,
                          classes=C, t1=0.5, t2=1.0)
    out_bf16 = loss_fn(pred_bf16, label)
    jax.block_until_ready(out_bf16)
    assert jnp.allclose(out_bf16, ref_bf16, rtol=1e-5, atol=1e-5), (out_bf16, ref_bf16)

    # 4) producer-side (C, N) layout: no wrapper transpose at all
    loss_fn_cn = make_focal_cosine_bitemper_loss(classes=C, t1=0.5, t2=1.0,
                                                 pred_layout="cn")
    out_cn = loss_fn_cn(jnp.asarray(pred.T), label)
    jax.block_until_ready(out_cn)
    assert jnp.allclose(out_cn, ref, rtol=1e-5, atol=1e-5), (out_cn, ref)

    print("KERNEL_OK")
</pallas_src>

<mosaic_0001>
module attributes {stable_mosaic.version = 11 : i64} {
  func.func @_focal_cosine_bitemper_kernel(%arg0: i32, %arg1: memref<5x384xf32, #tpu.memory_space<vmem>>, %arg2: memref<1x384xi32, #tpu.memory_space<vmem>>, %arg3: memref<1x1xf32, #tpu.memory_space<smem>>) attributes {dimension_semantics = [#tpu.dimension_semantics<parallel>], iteration_bounds = array<i64: 1>, scalar_prefetch = 0 : i64, scratch_operands = 0 : i64, tpu.core_type = #tpu.core_type<tc>, window_params = [{transform_indices = @transform_0, window_bounds = array<i64: 5, 384>}, {transform_indices = @transform_1, window_bounds = array<i64: 1, 384>}, {transform_indices = @transform_2, window_bounds = array<i64: 1, 1>}]} {
    %c0 = arith.constant 0 : index
    %c0_0 = arith.constant 0 : index
    %0 = vector.load %arg1[%c0, %c0_0] : memref<5x384xf32, #tpu.memory_space<vmem>>, vector<5x384xf32>
    %c0_1 = arith.constant 0 : index
    %c0_2 = arith.constant 0 : index
    %1 = vector.load %arg2[%c0_1, %c0_2] : memref<1x384xi32, #tpu.memory_space<vmem>>, vector<1x384xi32>
    %c384_i32 = arith.constant 384 : i32
    %2 = arith.muli %arg0, %c384_i32 : i32
    %3 = tpu.iota {dimensions = array<i32: 1>} : vector<1x384xi32>
    %4 = vector.broadcast %2 : i32 to vector<1x384xi32>
    %5 = arith.addi %4, %3 : vector<1x384xi32>
    %c300_i32 = arith.constant 300 : i32
    %6 = vector.broadcast %c300_i32 : i32 to vector<1x384xi32>
    %7 = arith.cmpi slt, %5, %6 : vector<1x384xi32>
    %8 = arith.extui %7 : vector<1x384xi1> to vector<1x384xi32>
    %9 = arith.sitofp %8 : vector<1x384xi32> to vector<1x384xf32>
    %cst = arith.constant 0.000000e+00 : f32
    %10 = vector.shape_cast %7 : vector<1x384xi1> to vector<1x384xi1>
    %11 = vector.broadcast %10 : vector<1x384xi1> to vector<5x384xi1>
    %12 = vector.broadcast %cst : f32 to vector<5x384xf32>
    %13 = arith.select %11, %0, %12 : vector<5x384xi1>, vector<5x384xf32>
    %c0_i32 = arith.constant 0 : i32
    %14 = vector.broadcast %c0_i32 : i32 to vector<1x384xi32>
    %15 = arith.select %7, %1, %14 : vector<1x384xi1>, vector<1x384xi32>
    %16 = tpu.iota {dimensions = array<i32: 0>} : vector<5x384xi32>
    %17 = vector.broadcast %15 : vector<1x384xi32> to vector<5x384xi32>
    %18 = arith.cmpi eq, %16, %17 : vector<5x384xi32>
    %19 = arith.extui %18 : vector<5x384xi1> to vector<5x384xi32>
    %20 = arith.sitofp %19 : vector<5x384xi32> to vector<5x384xf32>
    %21 = arith.mulf %13, %13 : vector<5x384xf32>
    %cst_3 = arith.constant dense<0.000000e+00> : vector<384xf32>
    %22 = vector.multi_reduction <add>, %21, %cst_3 [0] : vector<5x384xf32> to vector<384xf32>
    %23 = vector.shape_cast %22 : vector<384xf32> to vector<1x384xf32>
    %cst_4 = arith.constant 1.000000e-24 : f32
    %24 = vector.broadcast %cst_4 : f32 to vector<1x384xf32>
    %25 = arith.maximumf %23, %24 : vector<1x384xf32>
    %26 = math.rsqrt %25 : vector<1x384xf32>
    %27 = arith.mulf %20, %13 : vector<5x384xf32>
    %cst_5 = arith.constant dense<0.000000e+00> : vector<384xf32>
    %28 = vector.multi_reduction <add>, %27, %cst_5 [0] : vector<5x384xf32> to vector<384xf32>
    %29 = vector.shape_cast %28 : vector<384xf32> to vector<1x384xf32>
    %cst_6 = arith.constant dense<0xFF800000> : vector<384xf32>
    %30 = vector.multi_reduction <maximumf>, %13, %cst_6 [0] : vector<5x384xf32> to vector<384xf32>
    %31 = vector.shape_cast %30 : vector<384xf32> to vector<1x384xf32>
    %32 = vector.broadcast %31 : vector<1x384xf32> to vector<5x384xf32>
    %33 = arith.subf %13, %32 : vector<5x384xf32>
    %34 = math.exp %33 : vector<5x384xf32>
    %cst_7 = arith.constant dense<0.000000e+00> : vector<384xf32>
    %35 = vector.multi_reduction <add>, %34, %cst_7 [0] : vector<5x384xf32> to vector<384xf32>
    %36 = vector.shape_cast %35 : vector<384xf32> to vector<1x384xf32>
    %37 = tpu.reciprocal %36 : vector<1x384xf32> -> vector<1x384xf32>
    %38 = arith.mulf %20, %34 : vector<5x384xf32>
    %cst_8 = arith.constant dense<0.000000e+00> : vector<384xf32>
    %39 = vector.multi_reduction <add>, %38, %cst_8 [0] : vector<5x384xf32> to vector<384xf32>
    %40 = vector.shape_cast %39 : vector<384xf32> to vector<1x384xf32>
    %41 = arith.mulf %40, %37 : vector<1x384xf32>
    %42 = arith.mulf %29, %26 : vector<1x384xf32>
    %cst_9 = arith.constant 1.000000e+00 : f32
    %43 = vector.broadcast %cst_9 : f32 to vector<1x384xf32>
    %44 = arith.subf %43, %42 : vector<1x384xf32>
    %45 = math.log %36 : vector<1x384xf32>
    %46 = arith.subf %29, %31 : vector<1x384xf32>
    %47 = arith.subf %45, %46 : vector<1x384xf32>
    %cst_10 = arith.constant 1.000000e+00 : f32
    %48 = vector.broadcast %cst_10 : f32 to vector<1x384xf32>
    %49 = arith.subf %48, %41 : vector<1x384xf32>
    %50 = arith.mulf %49, %49 : vector<1x384xf32>
    %cst_11 = arith.constant 1.000000e+00 : f32
    %51 = vector.broadcast %cst_11 : f32 to vector<1x384xf32>
    %52 = arith.mulf %51, %50 : vector<1x384xf32>
    %53 = arith.mulf %52, %47 : vector<1x384xf32>
    %54 = vector.broadcast %37 : vector<1x384xf32> to vector<5x384xf32>
    %55 = arith.mulf %34, %54 : vector<5x384xf32>
    %56 = math.sqrt %41 : vector<1x384xf32>
    %cst_12 = arith.constant 1.000000e+00 : f32
    %57 = vector.broadcast %cst_12 : f32 to vector<1x384xf32>
    %58 = arith.subf %56, %57 : vector<1x384xf32>
    %cst_13 = arith.constant 5.000000e-01 : f32
    %59 = vector.broadcast %cst_13 : f32 to vector<1x384xf32>
    %60 = arith.divf %58, %59 : vector<1x384xf32>
    %cst_14 = arith.constant 1.00000008E-10 : f32
    %61 = vector.broadcast %cst_14 : f32 to vector<1x384xf32>
    %62 = arith.subf %61, %60 : vector<1x384xf32>
    %cst_15 = arith.constant 0.666666686 : f32
    %63 = vector.broadcast %cst_15 : f32 to vector<1x384xf32>
    %64 = arith.subf %62, %63 : vector<1x384xf32>
    %65 = math.sqrt %55 : vector<5x384xf32>
    %66 = arith.mulf %55, %65 : vector<5x384xf32>
    %cst_16 = arith.constant dense<0.000000e+00> : vector<384xf32>
    %67 = vector.multi_reduction <add>, %66, %cst_16 [0] : vector<5x384xf32> to vector<384xf32>
    %68 = vector.shape_cast %67 : vector<384xf32> to vector<1x384xf32>
    %cst_17 = arith.constant 0.666666686 : f32
    %69 = vector.broadcast %cst_17 : f32 to vector<1x384xf32>
    %70 = arith.mulf %68, %69 : vector<1x384xf32>
    %71 = arith.addf %64, %70 : vector<1x384xf32>
    %cst_18 = arith.constant 1.000000e-01 : f32
    %72 = vector.broadcast %cst_18 : f32 to vector<1x384xf32>
    %73 = arith.mulf %72, %53 : vector<1x384xf32>
    %74 = arith.addf %44, %73 : vector<1x384xf32>
    %cst_19 = arith.constant 0.699999988 : f32
    %75 = vector.broadcast %cst_19 : f32 to vector<1x384xf32>
    %76 = arith.mulf %75, %74 : vector<1x384xf32>
    %cst_20 = arith.constant 3.000000e-01 : f32
    %77 = vector.broadcast %cst_20 : f32 to vector<1x384xf32>
    %78 = arith.mulf %77, %71 : vector<1x384xf32>
    %79 = arith.addf %76, %78 : vector<1x384xf32>
    %80 = arith.mulf %79, %9 : vector<1x384xf32>
    %81 = vector.shape_cast %80 : vector<1x384xf32> to vector<1x1x384xf32>
    %cst_21 = arith.constant dense<0.000000e+00> : vector<1xf32>
    %82 = vector.multi_reduction <add>, %81, %cst_21 [1, 2] : vector<1x1x384xf32> to vector<1xf32>
    %83 = vector.shape_cast %82 : vector<1xf32> to vector<1x1x1xf32>
    %84 = vector.extract %83[0, 0, 0] : f32 from vector<1x1x1xf32>
    %cst_22 = arith.constant 0.00333333341 : f32
    %85 = arith.mulf %84, %cst_22 : f32
    %c0_23 = arith.constant 0 : index
    %c0_24 = arith.constant 0 : index
    %86 = memref.load %arg3[%c0_23, %c0_24] : memref<1x1xf32, #tpu.memory_space<smem>>
    memref.store %85, %arg3[%c0_23, %c0_24] : memref<1x1xf32, #tpu.memory_space<smem>>
    return
  }
  func.func @transform_0(%arg0: i32) -> (i32, i32) {
    %c0_i32 = arith.constant 0 : i32
    %c0_i32_0 = arith.constant 0 : i32
    return %c0_i32, %arg0 : i32, i32
  }
  func.func @transform_1(%arg0: i32) -> (i32, i32) {
    %c0_i32 = arith.constant 0 : i32
    %c0_i32_0 = arith.constant 0 : i32
    return %c0_i32, %arg0 : i32, i32
  }
  func.func @transform_2(%arg0: i32) -> (i32, i32) {
    %c0_i32 = arith.constant 0 : i32
    %c0_i32_0 = arith.constant 0 : i32
    return %arg0, %c0_i32 : i32, i32
  }
}

</mosaic_0001>

<bundles_post_ra>
// kernel: loss_fn.1
= control target key start
LH: loop header
LB: loop body
LE: loop exit
PB: predicated region body
PF: predicated region fallthrough
CT: control target
= control target key end

     0   :  { %vm81_vm0 = vcmask 1044480   ;;  %s648_s0 = inlined_call_operand.vmem [shape: f32[5,384], index: 0, kind: input, shape index: {}]   ;;  %s649_s1 = inlined_call_operand.vmem [shape: s32[1,384], index: 1, kind: input, shape index: {}]   ;;  %s650_s2 = inlined_call_operand.hbm [shape: f32[1,1], index: 2, kind: output, shape index: {}]  }
   0x1   :  { %v460_v0 = vld [vmem:[%s648_s0] sm:$0x1f]  ;;  %v465_v1 = vld [vmem:[%s648_s0 + $0x8] sm:$0x1f] }
   0x2   :  { %7 = vsyncpa [#allocation3], 0  ;;  %v133_v2 = vsel %vm81_vm0, %v460_v0, -inf  ;;  %v140_v3 = vsel %vm81_vm0, %v465_v1, -inf  ;;  %v17_v4 = vlaneseq  ;;  %v14_v16 = vld [vmem:[%s648_s0 + $0x10] sm:$0x1f]  ;;  %v78_v29 = vmul.f32 %v460_v0, %v460_v0 }
   0x3   :  { %v134_v5 = vrot.slane %v133_v2, 4  ;;  %v141_v6 = vrot.slane %v140_v3, 4  ;;  %v15_v21 = vld [vmem:[%s649_s1] sm:$0x7]  ;;  %v440_v45 = vmov 0.0   ;;  %v79_v47 = vmul.f32 %v465_v1, %v465_v1  ;;  %s428_s19 = scalar_lea.hbm %s650_s2, 16 }
   0x4   :  { %v18_v9 = vand.u32 127, %v17_v4  ;;  %v473_v14 = vshrl.u32 %v17_v4, 7  ;;  %v82_v36 = vsel %vm81_vm0, %v78_v29, 0.0  ;;  %p429_p0 = scmp.ne.s32.totalorder %s650_s2, %s428_s19  ;;  %p432_p1 = scmp.lt.u32.totalorder %s428_s19, %s650_s2 }
   0x5   :  { %v135_v7 = vmax.f32 %v133_v2, %v134_v5  ;;  %v142_v8 = vmax.f32 %v140_v3, %v141_v6  ;;  %v83_v41 = vrot.slane %v82_v36, 4  ;;  %v89_v59 = vsel %vm81_vm0, %v79_v47, 0.0 }
   0x6   :  { %v471_v12 = vadd.s32 256, %v18_v9  ;;  %v484_v20 = vsub.s32 0, %v473_v14  ;;  %v46_v24 = vsub.s32 1, %v473_v14  ;;  %v50_v38 = vsub.s32 2, %v473_v14  ;;  %p434_p2 = pnand %p432_p1, %p429_p0 }
   0x7   :  { %v136_v10 = vrot.slane %v135_v7, 2  ;;  %v143_v11 = vrot.slane %v142_v8, 2  ;;  %v84_v48 = vadd.f32 %v83_v41, %v82_v36  ;;  %v90_v6 = vrot.slane %v89_v59, 4 }
   0x8   :  { %vm27_vm1 = vcmp.lt.s32.totalorder %v471_v12, 300  ;;  %v43_v28 = vrot.slane %v15_v21, %v484_v20  ;;  %v47_v33 = vrot.slane %v15_v21, %v46_v24  ;;  %v51_v43 = vrot.slane %v15_v21, %v50_v38 }
   0x9   :  { %v137_v13 = vmax.f32 %v135_v7, %v136_v10  ;;  %v144_v15 = vmax.f32 %v142_v8, %v143_v11  ;;  %v481_v19 = vsel %vm27_vm1, %v14_v16, 0.0  ;;  %v85_v58 = vrot.slane %v84_v48, 2 }
   0xa   :  { %v147_v25 = vsel %vm81_vm0, %v481_v19, -inf  ;;  %v60_v35 = vrot.slane %v43_v28, %v484_v20  ;;  %v64_v39 = vrot.slane %v47_v33, %v484_v20  ;;  %v54_v52 = vsel %vm27_vm1, %v51_v43, 0 }
   0xb   :  { %v138_v17 = vrot.slane %v137_v13, 1  ;;  %v145_v18 = vrot.slane %v144_v15, 1  ;;  %v148_v30 = vrot.slane %v147_v25, 4  ;;  %v80_v57 = vmul.f32 %v481_v19, %v481_v19 }
   0xc   :  { %vm69_vm2 = vcmp.eq.s32.totalorder %v473_v14, %v60_v35  ;;  %vm70_vm3 = vcmp.eq.s32.totalorder %v473_v14, %v64_v39  ;;  %v68_v2 = vrot.slane %v54_v52, %v484_v20  ;;  %v86_v16 = vadd.f32 %v85_v58, %v84_v48 }
   0xd   :  { %v489_v22 = vmax.f32 %v137_v13, %v138_v17  ;;  %v491_v23 = vmax.f32 %v144_v15, %v145_v18  ;;  %v149_v34 = vmax.f32 %v147_v25, %v148_v30  ;;  %v379_v46 = vsel %vm69_vm2, 1.0, %v440_v45 }
   0xe   :  { %v380_v51 = vsel %vm70_vm3, 1.0, %v440_v45  ;;  %v109_v7 = vmul.f32 %v379_v46, %v460_v0  ;;  %v96_v17 = vsel %vm81_vm0, %v80_v57, 0.0  ;;  %vm71_vm4 = vcmp.eq.s32.totalorder %v473_v14, %v68_v2 }
   0xf   :  { %v154_v26 = vsub.f32 %v460_v0, %v489_v22  ;;  %v155_v27 = vsub.f32 %v465_v1, %v491_v23  ;;  %v150_v37 = vrot.slane %v149_v34, 2  ;;  %v110_v8 = vmul.f32 %v380_v51, %v465_v1 }
  0x10   :  { %v91_v24 = vadd.f32 %v90_v6, %v89_v59  ;;  %v112_v25 = vsel %vm81_vm0, %v109_v7, 0.0  ;;  %v381_v28 = vsel %vm71_vm4, 1.0, %v440_v45  ;;  %v87_v29 = vrot.slane %v86_v16, 1 }
  0x11   :  { %v157_v31 = vmul.f32 1.442695, %v154_v26  ;;  %v159_v32 = vmul.f32 1.442695, %v155_v27  ;;  %v151_v40 = vmax.f32 %v149_v34, %v150_v37  ;;  %v119_v1 = vsel %vm81_vm0, %v110_v8, 0.0 }
  0x12   :  { %v97_v30 = vrot.slane %v96_v17, 4  ;;  %v113_v33 = vrot.slane %v112_v25, 4  ;;  %v92_v36 = vrot.slane %v91_v24, 2  ;;  %v120_v37 = vrot.slane %v119_v1, 4 }
  0x13   :  { %392 = vpow2.f32 %v157_v31  ;;  %v152_v42 = vrot.slane %v151_v40, 1 }
  0x14   :  { %394 = vpow2.f32 %v159_v32  ;;  %v111_v32 = vmul.f32 %v381_v28, %v481_v19  ;;  %v98_v43 = vadd.f32 %v97_v30, %v96_v17 }
  0x15   :  { %v509_v44 = vmax.f32 %v151_v40, %v152_v42  ;;  %v88_v42 = vadd.f32 %v87_v29, %v86_v16 }
  0x16   :  { %v126_v48 = vsel %vm81_vm0, %v111_v32, 0.0 }
  0x17   :  { %v156_v49 = vsub.f32 %v481_v19, %v509_v44  ;;  %v114_v19 = vadd.f32 %v113_v33, %v112_v25  ;;  %v103_v57 = vmax.f32 %v88_v42, 1e-24 }
  0x19   :  { %v161_v53 = vmul.f32 1.442695, %v156_v49 }
  0x1b   :  { %396 = vpow2.f32 %v161_v53 }
  0x1d   :  { %v516_v50 = vpop.eup %392 }
  0x1e   :  { %v163_v54 = vsel %vm81_vm0, %v516_v50, 0.0  ;;  %v187_v55 = vmul.f32 %v516_v50, %v379_v46  ;;  %v524_v56 = vpop.eup %394 }
  0x1f   :  { %v164_v60 = vrot.slane %v163_v54, 4  ;;  %v170_v61 = vsel %vm81_vm0, %v524_v56, 0.0  ;;  %v188_v62 = vmul.f32 %v524_v56, %v380_v51  ;;  %v121_v51 = vadd.f32 %v120_v37, %v119_v1 }
  0x20   :  { %v190_v63 = vsel %vm81_vm0, %v187_v55, 0.0  ;;  %v171_v4 = vrot.slane %v170_v61, 4  ;;  %v93_v55 = vadd.f32 %v92_v36, %v91_v24 }
  0x21   :  { %v165_v3 = vadd.f32 %v164_v60, %v163_v54  ;;  %v191_v5 = vrot.slane %v190_v63, 4  ;;  %v197_v9 = vsel %vm81_vm0, %v188_v62, 0.0  ;;  %v115_v62 = vrot.slane %v114_v19, 2 }
  0x22   :  { %v172_v11 = vadd.f32 %v171_v4, %v170_v61  ;;  %v198_v15 = vrot.slane %v197_v9, 4  ;;  %v99_v61 = vrot.slane %v98_v43, 2  ;;  %v122_v2 = vrot.slane %v121_v51, 2 }
  0x23   :  { %v166_v10 = vrot.slane %v165_v3, 2  ;;  %v192_v13 = vadd.f32 %v191_v5, %v190_v63  ;;  %v127_v63 = vrot.slane %v126_v48, 4  ;;  %v94_v6 = vrot.slane %v93_v55, 1 }
  0x24   :  { %v173_v20 = vrot.slane %v172_v11, 2  ;;  %v199_v21 = vadd.f32 %v198_v15, %v197_v9  ;;  %v123_v15 = vadd.f32 %v122_v2, %v121_v51 }
  0x25   :  { %v167_v18 = vadd.f32 %v166_v10, %v165_v3  ;;  %v193_v0 = vrot.slane %v192_v13, 2  ;;  %v543_v35 = vpop.eup %396  ;;  %v100_v10 = vadd.f32 %v99_v61, %v98_v43 }
  0x26   :  { %v174_v27 = vadd.f32 %v173_v20, %v172_v11  ;;  %v200_v31 = vrot.slane %v199_v21, 2  ;;  %v177_v40 = vsel %vm81_vm0, %v543_v35, 0.0  ;;  %v189_v41 = vmul.f32 %v543_v35, %v381_v28 }
  0x27   :  { %v168_v26 = vrot.slane %v167_v18, 1  ;;  %v194_v38 = vadd.f32 %v193_v0, %v192_v13  ;;  %v178_v46 = vrot.slane %v177_v40, 4  ;;  %v116_v11 = vadd.f32 %v115_v62, %v114_v19 }
  0x28   :  { %v175_v34 = vrot.slane %v174_v27, 1  ;;  %v201_v47 = vadd.f32 %v200_v31, %v199_v21  ;;  %v204_v49 = vsel %vm81_vm0, %v189_v41, 0.0  ;;  %v128_v13 = vadd.f32 %v127_v63, %v126_v48 }
  0x29   :  { %v169_v14 = vadd.f32 %v168_v26, %v167_v18  ;;  %v179_v52 = vadd.f32 %v178_v46, %v177_v40  ;;  %v195_v53 = vrot.slane %v194_v38, 1  ;;  %v205_v54 = vrot.slane %v204_v49, 4 }
  0x2a   :  { %v176_v39 = vadd.f32 %v175_v34, %v174_v27  ;;  %v202_v59 = vrot.slane %v201_v47, 1  ;;  %v95_v21 = vadd.f32 %v94_v6, %v93_v55  ;;  %v101_v25 = vrot.slane %v100_v10, 1 }
  0x2b   :  { %398 = vrcp.f32 %v169_v14  ;;  %v180_v58 = vrot.slane %v179_v52, 2  ;;  %v206_v60 = vadd.f32 %v205_v54, %v204_v49  ;;  %v196_v4 = vadd.f32 %v195_v53, %v194_v38 }
  0x2c   :  { %400 = vrcp.f32 %v176_v39  ;;  %v203_v8 = vadd.f32 %v202_v59, %v201_v47  ;;  %v129_v0 = vrot.slane %v128_v13, 2  ;;  %v117_v26 = vrot.slane %v116_v11, 1 }
  0x2d   :  { %v181_v3 = vadd.f32 %v180_v58, %v179_v52  ;;  %v207_v5 = vrot.slane %v206_v60, 2  ;;  %402 = vrsqrt.f32 %v103_v57  ;;  %v124_v27 = vrot.slane %v123_v15, 1 }
  0x2e   :  { %404 = vlog2.f32 %v169_v14  ;;  %v104_v30 = vmax.f32 %v95_v21, 1e-24  ;;  %v102_v31 = vadd.f32 %v101_v25, %v100_v10  ;;  %v130_v32 = vadd.f32 %v129_v0, %v128_v13 }
  0x2f   :  { %v182_v7 = vrot.slane %v181_v3, 1  ;;  %406 = vlog2.f32 %v176_v39  ;;  %v208_v20 = vadd.f32 %v207_v5, %v206_v60  ;;  %v118_v14 = vadd.f32 %v117_v26, %v116_v11 }
  0x30   :  { %v125_v34 = vadd.f32 %v124_v27, %v123_v15  ;;  %v131_v38 = vrot.slane %v130_v32, 1 }
  0x31   :  { %v183_v16 = vadd.f32 %v182_v7, %v181_v3  ;;  %v209_v29 = vrot.slane %v208_v20, 1  ;;  %v226_v42 = vsub.f32 %v118_v14, %v489_v22 }
  0x32   :  { %v227_v43 = vsub.f32 %v125_v34, %v491_v23  ;;  %v132_v11 = vadd.f32 %v131_v38, %v130_v32 }
  0x33   :  { %408 = vrcp.f32 %v183_v16  ;;  %v210_v36 = vadd.f32 %v209_v29, %v208_v20 }
  0x35   :  { %v399_v9 = vpop.eup %398 }
  0x36   :  { %v550_v17 = vmul.f32 %v399_v9, %v196_v4  ;;  %v401_v18 = vpop.eup %400  ;;  %v555_v1 = vmul.f32 %v399_v9, %v516_v50 }
  0x37   :  { %v552_v24 = vmul.f32 %v401_v18, %v203_v8  ;;  %v558_v28 = vmul.f32 %v401_v18, %v524_v56  ;;  %v403_v33 = vpop.eup %402  ;;  %v105_v56 = vmax.f32 %v102_v31, 1e-24 }
  0x38   :  { %410 = vrsqrt.f32 %v550_v17  ;;  %v405_v50 = vpop.eup %404  ;;  %v564_v40 = vmul.f32 %v403_v33, %v118_v14  ;;  %v232_v19 = vsub.f32 1.0, %v550_v17  ;;  %vm246_vm5 = vcmp.eq.f32.partialorder %v550_v17, inf }
  0x39   :  { %412 = vrsqrt.f32 %v552_v24  ;;  %v407_v37 = vpop.eup %406  ;;  %v221_v41 = vmul.f32 0.6931472, %v405_v50  ;;  %v233_v51 = vsub.f32 1.0, %v552_v24  ;;  %vm248_vm6 = vcmp.eq.f32.partialorder %v550_v17, 0.0 }
  0x3a   :  { %414 = vrsqrt.f32 %v555_v1  ;;  %v223_v47 = vmul.f32 0.6931472, %v407_v37  ;;  %v249_v23 = vand.u32 2147483648, %v550_v17  ;;  %vm253_vm7 = vcmp.eq.f32.partialorder %v552_v24, inf }
  0x3b   :  { %416 = vrsqrt.f32 %v558_v28  ;;  %vm255_vm8 = vcmp.eq.f32.partialorder %v552_v24, 0.0  ;;  %v256_v53 = vand.u32 2147483648, %v552_v24  ;;  %vm280_vm9 = vcmp.eq.f32.partialorder %v555_v1, inf }
  0x3c   :  { %418 = vrsqrt.f32 %v104_v30  ;;  %vm282_vm10 = vcmp.eq.f32.partialorder %v555_v1, 0.0  ;;  %v283_v57 = vand.u32 2147483648, %v555_v1  ;;  %vm287_vm11 = vcmp.eq.f32.partialorder %v558_v28, inf }
  0x3d   :  { %v409_v39 = vpop.eup %408  ;;  %420 = vlog2.f32 %v183_v16  ;;  %v290_v61 = vand.u32 2147483648, %v558_v28  ;;  %v229_v62 = vsub.f32 %v221_v41, %v226_v42  ;;  %v235_v63 = vmul.f32 %v232_v19, %v232_v19 }
  0x3e   :  { %v568_v46 = vmul.f32 %v409_v39, %v210_v36  ;;  %v572_v48 = vmul.f32 %v409_v39, %v543_v35  ;;  %vm289_vm12 = vcmp.eq.f32.partialorder %v558_v28, 0.0  ;;  %v230_v4 = vsub.f32 %v223_v47, %v227_v43 }
  0x3f   :  { %v236_v5 = vmul.f32 %v233_v51, %v233_v51  ;;  %v238_v25 = vmul.f32 %v235_v63, %v229_v62  ;;  %v228_v39 = vsub.f32 %v132_v11, %v509_v44 }
  0x40   :  { %422 = vrsqrt.f32 %v568_v46  ;;  %vm260_vm13 = vcmp.eq.f32.partialorder %v568_v46, inf  ;;  %vm262_vm14 = vcmp.eq.f32.partialorder %v568_v46, 0.0  ;;  %v263_v31 = vand.u32 2147483648, %v568_v46 }
  0x41   :  { %424 = vrsqrt.f32 %v572_v48  ;;  %vm294_vm15 = vcmp.eq.f32.partialorder %v572_v48, inf  ;;  %vm296_vm2 = vcmp.eq.f32.partialorder %v572_v48, 0.0  ;;  %v297_v14 = vand.u32 2147483648, %v572_v48 }
  0x42   :  { %v411_v49 = vpop.eup %410  ;;  %426 = vrsqrt.f32 %v105_v56 }
  0x43   :  { %v413_v52 = vpop.eup %412  ;;  %v245_v22 = vmul.f32 %v411_v49, %v550_v17 }
  0x44   :  { %v252_v35 = vmul.f32 %v413_v52, %v552_v24  ;;  %v415_v54 = vpop.eup %414 }
  0x45   :  { %v247_v55 = vsel %vm246_vm5, %v550_v17, %v245_v22  ;;  %v417_v58 = vpop.eup %416  ;;  %v279_v60 = vmul.f32 %v415_v54, %v555_v1  ;;  %v217_v17 = vsub.f32 1.0, %v564_v40  ;;  %v234_v40 = vsub.f32 1.0, %v568_v46 }
  0x46   :  { %v254_v59 = vsel %vm253_vm7, %v552_v24, %v252_v35  ;;  %v286_v2 = vmul.f32 %v417_v58, %v558_v28  ;;  %v419_v3 = vpop.eup %418  ;;  %v250_v6 = vsel %vm248_vm6, %v249_v23, %v247_v55  ;;  %v239_v24 = vmul.f32 %v236_v5, %v230_v4 }
  0x47   :  { %v281_v7 = vsel %vm280_vm9, %v555_v1, %v279_v60  ;;  %v257_v8 = vsel %vm255_vm8, %v256_v53, %v254_v59  ;;  %v215_v16 = vmul.f32 %v419_v3, %v125_v34  ;;  %v382_v18 = vadd.f32 -1.0, %v250_v6  ;;  %v421_v21 = vpop.eup %420 }
  0x48   :  { %v284_v9 = vsel %vm282_vm10, %v283_v57, %v281_v7  ;;  %v288_v10 = vsel %vm287_vm11, %v558_v28, %v286_v2  ;;  %v383_v0 = vadd.f32 -1.0, %v257_v8  ;;  %v225_v38 = vmul.f32 0.6931472, %v421_v21 }
  0x49   :  { %v291_v13 = vsel %vm289_vm12, %v290_v61, %v288_v10  ;;  %v299_v15 = vmul.f32 %v284_v9, %v555_v1  ;;  %v269_v33 = vmul.f32 2.0, %v382_v18  ;;  %v218_v42 = vsub.f32 1.0, %v215_v16 }
  0x4a   :  { %v300_v20 = vmul.f32 %v291_v13, %v558_v28  ;;  %v423_v27 = vpop.eup %422  ;;  %v270_v36 = vmul.f32 2.0, %v383_v0  ;;  %v329_v22 = vmul.f32 0.1, %v238_v25  ;;  %v330_v54 = vmul.f32 0.1, %v239_v24 }
  0x4b   :  { %v302_v26 = vsel %vm81_vm0, %v299_v15, 0.0  ;;  %v259_v30 = vmul.f32 %v423_v27, %v568_v46  ;;  %v425_v32 = vpop.eup %424  ;;  %v272_v49 = vsub.f32 1.0000001e-10, %v269_v33  ;;  %v231_v55 = vsub.f32 %v225_v38, %v228_v39 }
  0x4c   :  { %v303_v29 = vrot.slane %v302_v26, 4  ;;  %v309_v1 = vsel %vm81_vm0, %v300_v20, 0.0  ;;  %v293_v37 = vmul.f32 %v425_v32, %v572_v48  ;;  %v427_v23 = vpop.eup %426  ;;  %v273_v44 = vsub.f32 1.0000001e-10, %v270_v36 }
  0x4d   :  { %v310_v28 = vrot.slane %v309_v1, 4  ;;  %v261_v50 = vsel %vm260_vm13, %v568_v46, %v259_v30  ;;  %v237_v46 = vmul.f32 %v234_v40, %v234_v40  ;;  %v385_v61 = vadd.f32 -0.6666667, %v272_v49 }
  0x4e   :  { %v304_v34 = vadd.f32 %v303_v29, %v302_v26  ;;  %v264_v43 = vsel %vm262_vm14, %v263_v31, %v261_v50  ;;  %v295_v47 = vsel %vm294_vm15, %v572_v48, %v293_v37  ;;  %v332_v2 = vadd.f32 %v329_v22, %v217_v17 }
  0x4f   :  { %v311_v56 = vadd.f32 %v310_v28, %v309_v1  ;;  %v298_v51 = vsel %vm296_vm2, %v297_v14, %v295_v47  ;;  %v384_v57 = vadd.f32 -1.0, %v264_v43  ;;  %v216_v3 = vmul.f32 %v427_v23, %v132_v11 }
  0x50   :  { %v305_v41 = vrot.slane %v304_v34, 2  ;;  %v301_v35 = vmul.f32 %v298_v51, %v572_v48  ;;  %v386_v4 = vadd.f32 -0.6666667, %v273_v44  ;;  %v333_v6 = vadd.f32 %v330_v54, %v218_v42 }
  0x51   :  { %v312_v19 = vrot.slane %v311_v56, 2  ;;  %v240_v7 = vmul.f32 %v237_v46, %v231_v55  ;;  %v271_v8 = vmul.f32 2.0, %v384_v57  ;;  %v335_v16 = vmul.f32 0.7, %v332_v2 }
  0x52   :  { %v306_v52 = vadd.f32 %v305_v41, %v304_v34  ;;  %v316_v60 = vsel %vm81_vm0, %v301_v35, 0.0  ;;  %v219_v18 = vsub.f32 1.0, %v216_v3  ;;  %v336_v21 = vmul.f32 0.7, %v333_v6 }
  0x53   :  { %v313_v53 = vadd.f32 %v312_v19, %v311_v56  ;;  %v317_v63 = vrot.slane %v316_v60, 4  ;;  %v274_v25 = vsub.f32 1.0000001e-10, %v271_v8  ;;  %v331_v0 = vmul.f32 0.1, %v240_v7 }
  0x54   :  { %v307_v58 = vrot.slane %v306_v52, 1  ;;  %vm347_vm0 = vcmask 1040384   ;;  %v378_v37 = vsel %vm27_vm1, 1.0, %v440_v45 }
  0x55   :  { %v314_v59 = vrot.slane %v313_v53, 1  ;;  %v318_v48 = vadd.f32 %v317_v63, %v316_v60  ;;  %v387_v1 = vadd.f32 -0.6666667, %v274_v25  ;;  %v334_v31 = vadd.f32 %v331_v0, %v219_v18 }
  0x56   :  { %v308_v62 = vadd.f32 %v307_v58, %v306_v52 }
  0x57   :  { %v315_v5 = vadd.f32 %v314_v59, %v313_v53  ;;  %v319_v13 = vrot.slane %v318_v48, 2  ;;  %v337_v50 = vmul.f32 0.7, %v334_v31 }
  0x58   :  { %v323_v9 = vmul.f32 0.6666667, %v308_v62 }
  0x59   :  { %v324_v10 = vmul.f32 0.6666667, %v315_v5  ;;  %v320_v24 = vadd.f32 %v319_v13, %v318_v48 }
  0x5a   :  { %v326_v15 = vadd.f32 %v385_v61, %v323_v9 }
  0x5b   :  { %v327_v20 = vadd.f32 %v386_v4, %v324_v10  ;;  %v321_v11 = vrot.slane %v320_v24, 1 }
  0x5c   :  { %v338_v26 = vmul.f32 0.3, %v326_v15 }
  0x5d   :  { %v339_v17 = vmul.f32 0.3, %v327_v20  ;;  %v322_v30 = vadd.f32 %v321_v11, %v320_v24 }
  0x5e   :  { %v341_v27 = vadd.f32 %v338_v26, %v335_v16 }
  0x5f   :  { %v342_v29 = vadd.f32 %v339_v17, %v336_v21  ;;  %v325_v33 = vmul.f32 0.6666667, %v322_v30 }
  0x60   :  { %v348_v28 = vsel %vm347_vm0, %v341_v27, 0.0 }
  0x61   :  { %v349_v32 = vsel %vm347_vm0, %v342_v29, 0.0  ;;  %v328_v34 = vadd.f32 %v387_v1, %v325_v33 }
  0x62   :  { %v350_v14 = vadd.f32 %v349_v32, %v348_v28 }
  0x63   :  { %v340_v36 = vmul.f32 0.3, %v328_v34 }
  0x65   :  { %v343_v56 = vadd.f32 %v340_v36, %v337_v50 }
  0x67   :  { %v346_v38 = vmul.f32 %v378_v37, %v343_v56 }
  0x69   :  { %v351_v39 = vsel %vm347_vm0, %v346_v38, 0.0 }
  0x6a   :  { %v352_v40 = vadd.f32 %v351_v39, %v350_v14 }
  0x6c   :  { %353 = vadd.xlane.f32.xlu0 %v352_v40 }
  0xf9   :  { %v354_v41 = vpop.xlane.xlu0 %353 }
  0xfa   :  { %v355_v42 = vrot.slane %v354_v41, 4 }
  0xfc   :  { %v356_v43 = vadd.f32 %v355_v42, %v354_v41 }
  0xfe   :  { %v357_v47 = vrot.slane %v356_v43, 2 }
 0x100   :  { %v358_v19 = vadd.f32 %v357_v47, %v356_v43 }
 0x102   :  { %v359_v49 = vrot.slane %v358_v19, 1 }
 0x104   :  { %v360_v51 = vadd.f32 %v359_v49, %v358_v19 }
 0x106   :  { %388 = vpush %v360_v51 }
 0x137   :  { %s389_s0 = spop %388 }
 0x138   :  { %s362_s1 = smul.f32 0.0033333334, %s389_s0 }
 0x13a   :  { %364 = sst [smem:[#allocation2]] %s362_s1 }
 0x13b   :  { %437 = shalt.err (!%p434_p2)
}
 0x13c   :  { %s441_s24 = smov [#allocation2]  }
 0x13d   :  { %372 = dma.smem_to_hbm %s441_s24, 16, %s650_s2, [#allocation3]  }
 0x13e   :  { %438 = dma.done.wait [#allocation3], 16  }
 0x13f   :  { %439 = vsyncadd [#allocation3], 4294967280 }
 0x140   :  { %376 = sfence }
 0x141   :  { %377 = vsyncpa [#allocation3], 1 }

</bundles_post_ra>
